<compile_context>
chip_gen: v7x
topology: tpu7x:2x2x1
jax: 0.10.0
libtpu: 0.0.40
codegen_flags: <defaults>
</compile_context>

<pallas_src>
import functools
import math

import jax
import jax.numpy as jnp
from jax.experimental import pallas as pl
from jax.experimental.pallas import tpu as pltpu


def _round_up(a, b):
    return ((a + b - 1) // b) * b


# --------------------------------------------------------------------- GELU --
_ERF_A = (0.254829592, -0.284496736, 1.421413741, -1.453152027, 1.061405429)
_ERF_P = 0.3275911
_INV_SQRT2 = 0.7071067811865476


def _erf(x):
    """Abramowitz & Stegun 7.1.26 erf, |err| <= 1.5e-7 (in f32).

    Built from mul/add/div/exp only so it lowers on every Pallas/Mosaic
    version (native lax.erf support is version dependent).  Weak-typed python
    constants keep the math in x.dtype (bf16 fast path stays bf16 on the VPU).
    """
    sign = jnp.where(x < 0.0, -1.0, 1.0).astype(x.dtype)
    ax = jnp.abs(x)
    t = 1.0 / (1.0 + _ERF_P * ax)
    a1, a2, a3, a4, a5 = _ERF_A
    poly = ((((a5 * t + a4) * t + a3) * t + a2) * t + a1) * t
    return sign * (1.0 - poly * jnp.exp(-(ax * ax)))


def _gelu(x, approximate):
    if approximate:   # PyTorch nn.GELU(approximate='tanh')
        c = math.sqrt(2.0 / math.pi)
        return 0.5 * x * (1.0 + jnp.tanh(c * (x + 0.044715 * (x * x * x))))
    # PyTorch nn.GELU() default (exact erf) to <= 1.5e-7.
    return 0.5 * x * (1.0 + _erf(x * _INV_SQRT2))


# ------------------------------------------------------------------ kernels --
def _mlp_kernel_resident(x_ref, w1_ref, b1_ref, w2_ref, b2_ref, o_ref, *,
                         approximate, act_dtype):
    """Whole hidden dimension resident; one row tile per grid step."""
    h = jnp.dot(x_ref[...], w1_ref[...], preferred_element_type=jnp.float32)
    h = h.astype(act_dtype) + b1_ref[...].astype(act_dtype)   # (1, H) broadcasts
    h = _gelu(h, approximate)
    o = jnp.dot(h.astype(w2_ref.dtype), w2_ref[...],
                preferred_element_type=jnp.float32)
    o_ref[...] = (o + b2_ref[...]).astype(o_ref.dtype)
    # TODO(synk): dropout with p > 0.0 would need pltpu.prng_* + mask; the
    # module is used with p = 0.0 (identity), so it is omitted.


def _mlp_kernel_htiled_accout(x_ref, w1_ref, b1_ref, w2_ref, b2_ref, o_ref, *,
                              approximate, act_dtype):
    """Hidden dim tiled (grid axis 1); f32 output block is the accumulator."""
    hi = pl.program_id(1)

    @pl.when(hi == 0)
    def _():
        o_ref[...] = jnp.broadcast_to(b2_ref[...], o_ref.shape)

    h = jnp.dot(x_ref[...], w1_ref[...], preferred_element_type=jnp.float32)
    h = h.astype(act_dtype) + b1_ref[...].astype(act_dtype)
    h = _gelu(h, approximate)
    o_ref[...] += jnp.dot(h.astype(w2_ref.dtype), w2_ref[...],
                          preferred_element_type=jnp.float32)


def _mlp_kernel_htiled_scratch(x_ref, w1_ref, b1_ref, w2_ref, b2_ref, o_ref,
                               acc_ref, *, approximate, act_dtype):
    """Hidden dim tiled; fc2 accumulated in an f32 VMEM scratch (non-f32 out)."""
    hi = pl.program_id(1)

    @pl.when(hi == 0)
    def _():
        acc_ref[...] = jnp.zeros_like(acc_ref)

    h = jnp.dot(x_ref[...], w1_ref[...], preferred_element_type=jnp.float32)
    h = h.astype(act_dtype) + b1_ref[...].astype(act_dtype)
    h = _gelu(h, approximate)
    acc_ref[...] += jnp.dot(h.astype(w2_ref.dtype), w2_ref[...],
                            preferred_element_type=jnp.float32)

    @pl.when(hi == pl.num_programs(1) - 1)
    def _():
        o_ref[...] = (acc_ref[...] + b2_ref[...]).astype(o_ref.dtype)


# ---------------------------------------------------------------- VMEM math --
def _vmem_capacity_bytes():
    """Per-TensorCore VMEM capacity; conservative 64 MiB fallback (= v7x)."""
    try:
        cap = getattr(pltpu.get_tpu_info(), "vmem_capacity_bytes", None)
        if cap:
            return int(cap)
    except Exception:
        pass
    return 64 << 20


def _footprint_bytes(tm, d_in, h_tile, d_out, x_it, w_it, o_it, resident):
    """VMEM bytes used by the pipeline buffers + in-kernel temporaries."""
    wbuf = 1 if resident else 2            # resident weights: single-buffered
    weights = wbuf * (d_in * h_tile + h_tile * d_out) * w_it
    biases = wbuf * h_tile * 4 + d_out * 4
    io = 2 * tm * d_in * x_it + 2 * tm * d_out * o_it   # double-buffered x / o
    acc = tm * d_out * 4                                  # fc2 f32 accumulator
    hidden = tm * h_tile * (4 + w_it)    # f32 fc1 result + act-dtype GELU copy
    return weights + biases + io + acc + hidden


def _auto_h_tile(h_dim, fits):
    """Largest divisor of h_dim (multiple of 256, else 128) whose footprint fits."""
    for align in (256, 128):
        cands = sorted((d for d in range(align, h_dim, align) if h_dim % d == 0),
                       reverse=True)
        if not cands:
            continue
        for c in cands:
            if fits(c):
                return c
        return cands[-1]                  # nothing fits: smallest aligned tile
    return h_dim                          # H not 128-aligned: stay resident


# ------------------------------------------------------------------ wrapper --
@functools.partial(jax.jit, static_argnames=("tm", "th", "compute_dtype",
                                             "approximate_gelu"))
def mlp_forward(x, w1, b1, w2, b2, *, tm=None, th=None, compute_dtype=None,
                approximate_gelu=False):
    """y = fc2(gelu(fc1(x))), dropout p = 0.0 (identity).

    x  : (..., D_in)
    w1 : (D_in, H)   w2 : (H, D_out)   ((in, out) layout = transpose of the
         PyTorch nn.Linear storage)
    b1 : (H,) or (1, H), f32            b2 : (D_out,) or (1, D_out), f32

    tm            : row tile; None = auto (512 bf16 on 128-MiB parts, else 256).
    th            : hidden-dim tile; None = auto (resident whenever it fits).
    compute_dtype : e.g. jnp.bfloat16 = MXU-native fast path on v6e/v7x
                    (f32 accumulation kept; output stays in x.dtype).
    approximate_gelu : tanh GELU (PyTorch GELU(approximate='tanh')).
    """
    d_in = x.shape[-1]
    h_dim = w1.shape[1]
    d_out = w2.shape[1]
    lead = x.shape[:-1]
    m = math.prod(lead)

    out_dtype = x.dtype
    cdt = jnp.dtype(compute_dtype) if compute_dtype is not None else jnp.dtype(x.dtype)
    act_dtype = cdt if cdt.itemsize < 4 else jnp.dtype(jnp.float32)

    x2 = x.reshape(m, d_in).astype(cdt)
    w1c = w1.astype(cdt)
    w2c = w2.astype(cdt)
    b1r = b1.reshape(1, h_dim).astype(jnp.float32)
    b2r = b2.reshape(1, d_out).astype(jnp.float32)

    x_it = w_it = cdt.itemsize
    o_it = jnp.dtype(out_dtype).itemsize

    vmem_cap = _vmem_capacity_bytes()
    budget = int(0.80 * vmem_cap)          # headroom for compiler scratch

    # Row tile default: 512 for bf16 on 128-MiB parts (v5e/v6e), else 256.
    tm0 = tm if tm is not None else (512 if (w_it <= 2 and vmem_cap >= (96 << 20))
                                     else 256)
    tm_eff = max(8, min(_round_up(tm0, 8), _round_up(m, 8)))

    # Resident-weights fast path whenever the footprint fits the VMEM budget.
    if th is not None:
        resident = th >= h_dim
    else:
        resident = _footprint_bytes(tm_eff, d_in, h_dim, d_out,
                                    x_it, w_it, o_it, True) <= budget

    if resident:
        h_tile = h_dim
        # Megacore: don't leave v7x's second TensorCore idle when there are
        # plenty of rows.  Free on 1-TC chips (constant-index weights -> no
        # extra HBM traffic, just one extra ~0.35us grid step).
        if m >= 256 and pl.cdiv(m, tm_eff) < 2:
            tm_eff = _round_up(pl.cdiv(m, 2), 8)
    else:
        # Larger row tile amortizes weight re-streaming in the h-tiled path
        # (weight HBM traffic per token ~ 1/tm).
        if tm is None:
            tm_eff = max(8, min(512, _round_up(m, 8)))
        if th is not None:
            if h_dim % th != 0:
                raise ValueError("th must divide the hidden dimension")
            if th % 128 != 0:
                raise ValueError("th must be a multiple of 128 (256 preferred)")
            h_tile = th
        else:
            h_tile = _auto_h_tile(
                h_dim,
                lambda c: _footprint_bytes(tm_eff, d_in, c, d_out,
                                           x_it, w_it, o_it, False) <= budget)
            if h_tile >= h_dim:            # H could not be tiled cleanly
                resident = True
        # If the chosen tile still overflows, shrink the row tile instead.
        while (not resident and tm is None and tm_eff > 128
               and _footprint_bytes(tm_eff, d_in, h_tile, d_out,
                                    x_it, w_it, o_it, False) > budget):
            tm_eff = _round_up(max(tm_eff // 2, 128), 8)

    grid_m = pl.cdiv(m, tm_eff)
    footprint = _footprint_bytes(tm_eff, d_in, h_tile, d_out,
                                 x_it, w_it, o_it, resident)
    vmem_limit = int(min(max(int(1.2 * footprint) + (4 << 20), 32 << 20), vmem_cap))

    def _const_spec(shape, index_map, single_buffer):
        if single_buffer:
            return pl.BlockSpec(shape, index_map, pipeline_mode=pl.Buffered(1))
        return pl.BlockSpec(shape, index_map)

    def _call_resident(single_buffer):
        kernel = functools.partial(_mlp_kernel_resident,
                                   approximate=approximate_gelu,
                                   act_dtype=act_dtype)
        return pl.pallas_call(
            kernel,
            out_shape=jax.ShapeDtypeStruct((m, d_out), out_dtype),
            grid_spec=pltpu.PrefetchScalarGridSpec(
                num_scalar_prefetch=0,
                grid=(grid_m,),
                in_specs=[
                    pl.BlockSpec((tm_eff, d_in), lambda i: (i, 0)),          # x
                    _const_spec((d_in, h_dim), lambda i: (0, 0), single_buffer),   # w1
                    _const_spec((1, h_dim), lambda i: (0, 0), single_buffer),      # b1
                    _const_spec((h_dim, d_out), lambda i: (0, 0), single_buffer),  # w2
                    _const_spec((1, d_out), lambda i: (0, 0), single_buffer),      # b2
                ],
                out_specs=pl.BlockSpec((tm_eff, d_out), lambda i: (i, 0)),
            ),
            compiler_params=pltpu.CompilerParams(
                dimension_semantics=("parallel",),
                vmem_limit_bytes=vmem_limit),
        )(x2, w1c, b1r, w2c, b2r)

    def _call_htiled(single_buffer):
        n_h = h_dim // h_tile
        acc_in_out = jnp.dtype(out_dtype) == jnp.dtype(jnp.float32)
        kern = _mlp_kernel_htiled_accout if acc_in_out else _mlp_kernel_htiled_scratch
        kernel = functools.partial(kern, approximate=approximate_gelu,
                                   act_dtype=act_dtype)
        scratch = [] if acc_in_out else [pltpu.VMEM((tm_eff, d_out), jnp.float32)]
        return pl.pallas_call(
            kernel,
            out_shape=jax.ShapeDtypeStruct((m, d_out), out_dtype),
            grid_spec=pltpu.PrefetchScalarGridSpec(
                num_scalar_prefetch=0,
                grid=(grid_m, n_h),
                in_specs=[
                    pl.BlockSpec((tm_eff, d_in), lambda i, hh: (i, 0)),      # x
                    pl.BlockSpec((d_in, h_tile), lambda i, hh: (0, hh)),     # w1
                    pl.BlockSpec((1, h_tile), lambda i, hh: (0, hh)),        # b1
                    pl.BlockSpec((h_tile, d_out), lambda i, hh: (hh, 0)),    # w2
                    _const_spec((1, d_out), lambda i, hh: (0, 0), single_buffer),  # b2
                ],
                out_specs=pl.BlockSpec((tm_eff, d_out), lambda i, hh: (i, 0)),
                scratch_shapes=scratch,
            ),
            compiler_params=pltpu.CompilerParams(
                dimension_semantics=("parallel", "arbitrary"),
                vmem_limit_bytes=vmem_limit),
        )(x2, w1c, b1r, w2c, b2r)

    build = _call_resident if resident else _call_htiled
    try:
        out = build(True)
    except Exception:
        # pipeline_mode=pl.Buffered(1) unsupported on this JAX version:
        # fall back to default double-buffered BlockSpecs.
        out = build(False)

    return out.reshape(*lead, d_out)


# ---------------------------------------------------------------- reference --
def mlp_reference(x, w1, b1, w2, b2, compute_dtype=None, approximate_gelu=False):
    """Pure-JAX reference using the same precision recipe as the kernel."""
    d_out = w2.shape[1]
    cdt = jnp.dtype(compute_dtype) if compute_dtype is not None else jnp.dtype(x.dtype)
    act_dtype = cdt if cdt.itemsize < 4 else jnp.dtype(jnp.float32)
    x2 = x.reshape(-1, x.shape[-1]).astype(cdt)
    h = jnp.dot(x2, w1.astype(cdt), preferred_element_type=jnp.float32)
    h = h.astype(act_dtype) + b1.reshape(1, -1).astype(act_dtype)
    h = _gelu(h, approximate_gelu)
    o = jnp.dot(h.astype(cdt), w2.astype(cdt), preferred_element_type=jnp.float32)
    o = o + b2.reshape(1, -1).astype(jnp.float32)
    return o.astype(x.dtype).reshape(*x.shape[:-1], d_out)


def init_mlp_params(key, in_features, hidden_features, out_features,
                    dtype=jnp.float32):
    """nn.Linear-like init.  Weights stored as (in, out); biases kept in f32."""
    k1, k2, k3, k4 = jax.random.split(key, 4)
    bound1 = 1.0 / math.sqrt(in_features)
    bound2 = 1.0 / math.sqrt(hidden_features)
    w1 = jax.random.uniform(k1, (in_features, hidden_features),
                            minval=-bound1, maxval=bound1,
                            dtype=jnp.float32).astype(dtype)
    b1 = jax.random.uniform(k2, (1, hidden_features),
                            minval=-bound1, maxval=bound1, dtype=jnp.float32)
    w2 = jax.random.uniform(k3, (hidden_features, out_features),
                            minval=-bound2, maxval=bound2,
                            dtype=jnp.float32).astype(dtype)
    b2 = jax.random.uniform(k4, (1, out_features),
                            minval=-bound2, maxval=bound2, dtype=jnp.float32)
    return w1, b1, w2, b2


if __name__ == "__main__":
    # Small but lane-dense shapes (last dims multiples of 128):
    # batch=2, tokens=8, in=128, hidden=4*128=512, out=128.
    B, N = 2, 8
    D_in, H, D_out = 128, 4 * 128, 128

    key = jax.random.PRNGKey(0)
    kx, kx2, kp = jax.random.split(key, 3)
    x = jax.random.normal(kx, (B, N, D_in), dtype=jnp.float32)
    w1, b1, w2, b2 = init_mlp_params(kp, D_in, H, D_out)

    ref = mlp_reference(x, w1, b1, w2, b2)

    # 1) f32, auto configuration (weights resident).
    y = jax.block_until_ready(mlp_forward(x, w1, b1, w2, b2))
    assert y.shape == (B, N, D_out)
    assert jnp.allclose(y, ref, atol=2e-4, rtol=2e-4)

    # 2) Hidden-dim tiled path (forced), f32 output block as accumulator.
    y_ht = jax.block_until_ready(mlp_forward(x, w1, b1, w2, b2, th=256))
    assert jnp.allclose(y_ht, ref, atol=2e-4, rtol=2e-4)

    # 3) Ragged row count (M=21): masked tail tile, no host-side padding copy.
    x_odd = jax.random.normal(kx2, (3, 7, D_in), dtype=jnp.float32)
    y_odd = jax.block_until_ready(mlp_forward(x_odd, w1, b1, w2, b2, tm=8))
    ref_odd = mlp_reference(x_odd, w1, b1, w2, b2)
    assert jnp.allclose(y_odd, ref_odd, atol=2e-4, rtol=2e-4)

    # 4) bf16 fast path: f32 in/out, bf16 MXU + bf16 bias-add/GELU, f32 accum.
    y_bf = jax.block_until_ready(
        mlp_forward(x, w1, b1, w2, b2, compute_dtype=jnp.bfloat16))
    ref_bf = mlp_reference(x, w1, b1, w2, b2, compute_dtype=jnp.bfloat16)
    assert jnp.allclose(y_bf, ref_bf, atol=5e-2, rtol=5e-2)

    # 5) bf16 activations/weights + h-tiled scratch-accumulator variant.
    xb = x.astype(jnp.bfloat16)
    w1b = w1.astype(jnp.bfloat16)
    w2b = w2.astype(jnp.bfloat16)
    y_b = jax.block_until_ready(mlp_forward(xb, w1b, b1, w2b, b2, th=256))
    ref_b = mlp_reference(xb, w1b, b1, w2b, b2)
    assert jnp.allclose(y_b.astype(jnp.float32), ref_b.astype(jnp.float32),
                        atol=5e-2, rtol=5e-2)

    print("KERNEL_OK")
</pallas_src>

<mosaic_0001>
module attributes {stable_mosaic.version = 11 : i64} {
  func.func @_mlp_kernel_resident(%arg0: i32, %arg1: memref<16x128xf32, #tpu.memory_space<vmem>>, %arg2: memref<128x512xf32, #tpu.memory_space<vmem>>, %arg3: memref<1x512xf32, #tpu.memory_space<vmem>>, %arg4: memref<512x128xf32, #tpu.memory_space<vmem>>, %arg5: memref<1x128xf32, #tpu.memory_space<vmem>>, %arg6: memref<16x128xf32, #tpu.memory_space<vmem>>) attributes {dimension_semantics = [#tpu.dimension_semantics<parallel>], iteration_bounds = array<i64: 1>, scalar_prefetch = 0 : i64, scratch_operands = 0 : i64, tpu.core_type = #tpu.core_type<tc>, window_params = [{transform_indices = @transform_0, window_bounds = array<i64: 16, 128>}, {pipeline_mode = #tpu.pipeline_mode<synchronous>, transform_indices = @transform_1, window_bounds = array<i64: 128, 512>}, {pipeline_mode = #tpu.pipeline_mode<synchronous>, transform_indices = @transform_2, window_bounds = array<i64: 1, 512>}, {pipeline_mode = #tpu.pipeline_mode<synchronous>, transform_indices = @transform_3, window_bounds = array<i64: 512, 128>}, {pipeline_mode = #tpu.pipeline_mode<synchronous>, transform_indices = @transform_4, window_bounds = array<i64: 1, 128>}, {transform_indices = @transform_5, window_bounds = array<i64: 16, 128>}]} {
    %c0 = arith.constant 0 : index
    %c0_0 = arith.constant 0 : index
    %0 = vector.load %arg1[%c0, %c0_0] : memref<16x128xf32, #tpu.memory_space<vmem>>, vector<16x128xf32>
    %c0_1 = arith.constant 0 : index
    %c0_2 = arith.constant 0 : index
    %1 = vector.load %arg2[%c0_1, %c0_2] : memref<128x512xf32, #tpu.memory_space<vmem>>, vector<128x512xf32>
    %cst = arith.constant dense<0.000000e+00> : vector<16x512xf32>
    %2 = tpu.matmul %0, %1, %cst {dimension_numbers = #tpu.dot_dimension_numbers<[1], [0], [0], [1], [0, 0, 1, 1], [], []>} : vector<16x128xf32>, vector<128x512xf32>, vector<16x512xf32> -> vector<16x512xf32>
    %c0_3 = arith.constant 0 : index
    %c0_4 = arith.constant 0 : index
    %3 = vector.load %arg3[%c0_3, %c0_4] : memref<1x512xf32, #tpu.memory_space<vmem>>, vector<1x512xf32>
    %4 = vector.broadcast %3 : vector<1x512xf32> to vector<16x512xf32>
    %5 = arith.addf %2, %4 : vector<16x512xf32>
    %cst_5 = arith.constant 5.000000e-01 : f32
    %6 = vector.broadcast %cst_5 : f32 to vector<16x512xf32>
    %7 = arith.mulf %6, %5 : vector<16x512xf32>
    %cst_6 = arith.constant 0.707106769 : f32
    %8 = vector.broadcast %cst_6 : f32 to vector<16x512xf32>
    %9 = arith.mulf %5, %8 : vector<16x512xf32>
    %cst_7 = arith.constant 0.000000e+00 : f32
    %10 = vector.broadcast %cst_7 : f32 to vector<16x512xf32>
    %11 = arith.cmpf olt, %9, %10 : vector<16x512xf32>
    %cst_8 = arith.constant -1.000000e+00 : f32
    %cst_9 = arith.constant 1.000000e+00 : f32
    %12 = vector.broadcast %cst_8 : f32 to vector<16x512xf32>
    %13 = vector.broadcast %cst_9 : f32 to vector<16x512xf32>
    %14 = arith.select %11, %12, %13 : vector<16x512xi1>, vector<16x512xf32>
    %15 = math.absf %9 : vector<16x512xf32>
    %cst_10 = arith.constant 0.327591091 : f32
    %16 = vector.broadcast %cst_10 : f32 to vector<16x512xf32>
    %17 = arith.mulf %16, %15 : vector<16x512xf32>
    %cst_11 = arith.constant 1.000000e+00 : f32
    %18 = vector.broadcast %cst_11 : f32 to vector<16x512xf32>
    %19 = arith.addf %18, %17 : vector<16x512xf32>
    %cst_12 = arith.constant 1.000000e+00 : f32
    %20 = vector.broadcast %cst_12 : f32 to vector<16x512xf32>
    %21 = arith.divf %20, %19 : vector<16x512xf32>
    %cst_13 = arith.constant 1.06140542 : f32
    %22 = vector.broadcast %cst_13 : f32 to vector<16x512xf32>
    %23 = arith.mulf %22, %21 : vector<16x512xf32>
    %cst_14 = arith.constant -1.45315206 : f32
    %24 = vector.broadcast %cst_14 : f32 to vector<16x512xf32>
    %25 = arith.addf %23, %24 : vector<16x512xf32>
    %26 = arith.mulf %25, %21 : vector<16x512xf32>
    %cst_15 = arith.constant 1.42141378 : f32
    %27 = vector.broadcast %cst_15 : f32 to vector<16x512xf32>
    %28 = arith.addf %26, %27 : vector<16x512xf32>
    %29 = arith.mulf %28, %21 : vector<16x512xf32>
    %cst_16 = arith.constant -0.284496725 : f32
    %30 = vector.broadcast %cst_16 : f32 to vector<16x512xf32>
    %31 = arith.addf %29, %30 : vector<16x512xf32>
    %32 = arith.mulf %31, %21 : vector<16x512xf32>
    %cst_17 = arith.constant 0.254829586 : f32
    %33 = vector.broadcast %cst_17 : f32 to vector<16x512xf32>
    %34 = arith.addf %32, %33 : vector<16x512xf32>
    %35 = arith.mulf %34, %21 : vector<16x512xf32>
    %36 = arith.mulf %15, %15 : vector<16x512xf32>
    %cst_18 = arith.constant 0.000000e+00 : f32
    %37 = vector.broadcast %cst_18 : f32 to vector<16x512xf32>
    %38 = arith.subf %37, %36 : vector<16x512xf32>
    %39 = math.exp %38 : vector<16x512xf32>
    %40 = arith.mulf %35, %39 : vector<16x512xf32>
    %cst_19 = arith.constant 1.000000e+00 : f32
    %41 = vector.broadcast %cst_19 : f32 to vector<16x512xf32>
    %42 = arith.subf %41, %40 : vector<16x512xf32>
    %43 = arith.mulf %14, %42 : vector<16x512xf32>
    %cst_20 = arith.constant 1.000000e+00 : f32
    %44 = vector.broadcast %cst_20 : f32 to vector<16x512xf32>
    %45 = arith.addf %44, %43 : vector<16x512xf32>
    %46 = arith.mulf %7, %45 : vector<16x512xf32>
    %c0_21 = arith.constant 0 : index
    %c0_22 = arith.constant 0 : index
    %47 = vector.load %arg4[%c0_21, %c0_22] : memref<512x128xf32, #tpu.memory_space<vmem>>, vector<512x128xf32>
    %cst_23 = arith.constant dense<0.000000e+00> : vector<16x128xf32>
    %48 = tpu.matmul %46, %47, %cst_23 {dimension_numbers = #tpu.dot_dimension_numbers<[1], [0], [0], [1], [0, 0, 1, 1], [], []>} : vector<16x512xf32>, vector<512x128xf32>, vector<16x128xf32> -> vector<16x128xf32>
    %c0_24 = arith.constant 0 : index
    %c0_25 = arith.constant 0 : index
    %49 = vector.load %arg5[%c0_24, %c0_25] : memref<1x128xf32, #tpu.memory_space<vmem>>, vector<1x128xf32>
    %50 = vector.broadcast %49 : vector<1x128xf32> to vector<16x128xf32>
    %51 = arith.addf %48, %50 : vector<16x128xf32>
    %c0_26 = arith.constant 0 : index
    %c0_27 = arith.constant 0 : index
    %52 = vector.load %arg6[%c0_26, %c0_27] : memref<16x128xf32, #tpu.memory_space<vmem>>, vector<16x128xf32>
    tpu.vector_store %arg6[%c0_26, %c0_27], %51 {strides = array<i32>} : memref<16x128xf32, #tpu.memory_space<vmem>>, vector<16x128xf32>,
    return
  }
  func.func @transform_0(%arg0: i32) -> (i32, i32) {
    %c0_i32 = arith.constant 0 : i32
    %c0_i32_0 = arith.constant 0 : i32
    return %arg0, %c0_i32 : i32, i32
  }
  func.func @transform_1(%arg0: i32) -> (i32, i32) {
    %c0_i32 = arith.constant 0 : i32
    %c0_i32_0 = arith.constant 0 : i32
    %c0_i32_1 = arith.constant 0 : i32
    return %c0_i32, %c0_i32_0 : i32, i32
  }
  func.func @transform_2(%arg0: i32) -> (i32, i32) {
    %c0_i32 = arith.constant 0 : i32
    %c0_i32_0 = arith.constant 0 : i32
    %c0_i32_1 = arith.constant 0 : i32
    return %c0_i32, %c0_i32_0 : i32, i32
  }
  func.func @transform_3(%arg0: i32) -> (i32, i32) {
    %c0_i32 = arith.constant 0 : i32
    %c0_i32_0 = arith.constant 0 : i32
    %c0_i32_1 = arith.constant 0 : i32
    return %c0_i32, %c0_i32_0 : i32, i32
  }
  func.func @transform_4(%arg0: i32) -> (i32, i32) {
    %c0_i32 = arith.constant 0 : i32
    %c0_i32_0 = arith.constant 0 : i32
    %c0_i32_1 = arith.constant 0 : i32
    return %c0_i32, %c0_i32_0 : i32, i32
  }
  func.func @transform_5(%arg0: i32) -> (i32, i32) {
    %c0_i32 = arith.constant 0 : i32
    %c0_i32_0 = arith.constant 0 : i32
    return %arg0, %c0_i32 : i32, i32
  }
}

</mosaic_0001>

<bundles_post_ra>
// kernel: mlp_forward.1
= control target key start
LH: loop header
LB: loop body
LE: loop exit
PB: predicated region body
PF: predicated region fallthrough
CT: control target
= control target key end

     0   :  { %10 = vsyncpa [#allocation3], 0  ;;  %s1348_s0 = inlined_call_operand.hbm [shape: f32[16,128], index: 0, kind: input, shape index: {}]   ;;  %s1349_s1 = inlined_call_operand.hbm [shape: f32[128,512], index: 1, kind: input, shape index: {}]   ;;  %s1350_s2 = inlined_call_operand.vmem [shape: f32[1,512], index: 2, kind: input, shape index: {}]   ;;  %s1351_s3 = inlined_call_operand.hbm [shape: f32[512,128], index: 3, kind: input, shape index: {}]   ;;  %s1352_s4 = inlined_call_operand.vmem [shape: f32[1,128], index: 4, kind: input, shape index: {}]   ;;  %s1353_s5 = inlined_call_operand.hbm [shape: f32[16,128], index: 5, kind: output, shape index: {}]  }
   0x1   :  { %11 = vsyncpa [#allocation6], 0 }
   0x2   :  { %12 = vsyncpa [#allocation4], 0  ;;  %s1102_s18 = smov [#allocation5]   ;;  %s1008_s22 = scalar_lea.hbm %s1349_s1, 8192 }
   0x3   :  { %s30_s19 = sshll.u32 %s1102_s18, 4  ;;  %p1009_p0 = scmp.ne.s32.totalorder %s1349_s1, %s1008_s22  ;;  %s31_s19 = int_to_ptr.vmem [resolvable:$true] %s30_s19 }
   0x4   :  { %p1012_p1 = scmp.lt.u32.totalorder %s1008_s22, %s1349_s1 }
   0x6   :  { %p1014_p2 = pnand %p1012_p1, %p1009_p0 }
   0x8   :  { %1017 = shalt.err (!%p1014_p2)
}
   0x9   :  { %s1018_s27 = scalar_lea.vmem %s31_s19, 8192  ;;  %p1023_p4 = scmp.lt.s32.totalorder %s31_s19, %s31_s19 }
   0xa   :  { %p1019_p3 = scmp.ne.s32.totalorder %s31_s19, %s1018_s27  ;;  %p1024_p5 = scmp.lt.s32.totalorder %s1018_s27, %s1018_s27 }
   0xc   :  { %p1025_p6 = por %p1024_p5, %p1023_p4 }
   0xe   :  { %p1026_p7 = pnand %p1025_p6, %p1019_p3 }
  0x10   :  { %1029 = shalt.err (!%p1026_p7)
}
  0x11   :  { %s1103_s28 = smov 512   ;;  %s1104_s29 = smov 32  }
  0x12   :  { %36 = dma.hbm_to_vmem [thread:$0]  %s1349_s1, 8192, %s31_s19, [#allocation6], %s1103_s28, %s1103_s28, %s1104_s29  }
  0x13   :  { %s1105_s7 = smov [#allocation2]   ;;  %s1030_s11 = scalar_lea.hbm %s1348_s0, 256 }
  0x14   :  { %s18_s8 = sshll.u32 %s1105_s7, 4  ;;  %p1031_p8 = scmp.ne.s32.totalorder %s1348_s0, %s1030_s11  ;;  %s19_s8 = int_to_ptr.vmem [resolvable:$true] %s18_s8 }
  0x15   :  { %p1034_p9 = scmp.lt.u32.totalorder %s1030_s11, %s1348_s0 }
  0x17   :  { %p1036_p10 = pnand %p1034_p9, %p1031_p8 }
  0x19   :  { %1039 = shalt.err (!%p1036_p10)
}
  0x1a   :  { %s1040_s16 = scalar_lea.vmem %s19_s8, 256  ;;  %p1045_p12 = scmp.lt.s32.totalorder %s19_s8, %s19_s8 }
  0x1b   :  { %p1041_p11 = scmp.ne.s32.totalorder %s19_s8, %s1040_s16  ;;  %p1046_p13 = scmp.lt.s32.totalorder %s1040_s16, %s1040_s16 }
  0x1d   :  { %p1047_p0 = por %p1046_p13, %p1045_p12 }
  0x1f   :  { %p1048_p1 = pnand %p1047_p0, %p1041_p11 }
  0x21   :  { %1051 = shalt.err (!%p1048_p1)
}
  0x22   :  { %s1106_s1 = smov 128   ;;  %s1107_s17 = smov 8  }
  0x23   :  { %24 = dma.hbm_to_vmem [thread:$0]  %s1348_s0, 256, %s19_s8, [#allocation3], %s1106_s1, %s1106_s1, %s1107_s17  }
  0x24   :  { %s1108_s20 = smov [#allocation7]   ;;  %s1052_s24 = scalar_lea.hbm %s1351_s3, 8192 }
  0x25   :  { %s44_s21 = sshll.u32 %s1108_s20, 4  ;;  %p1053_p2 = scmp.ne.s32.totalorder %s1351_s3, %s1052_s24  ;;  %s45_s21 = int_to_ptr.vmem [resolvable:$true] %s44_s21 }
  0x26   :  { %p1056_p3 = scmp.lt.u32.totalorder %s1052_s24, %s1351_s3 }
  0x28   :  { %p1058_p4 = pnand %p1056_p3, %p1053_p2 }
  0x2a   :  { %1061 = shalt.err (!%p1058_p4)
}
  0x2b   :  { %s1062_s29 = scalar_lea.vmem %s45_s21, 8192  ;;  %p1067_p6 = scmp.lt.s32.totalorder %s45_s21, %s45_s21 }
  0x2c   :  { %p1063_p5 = scmp.ne.s32.totalorder %s45_s21, %s1062_s29  ;;  %p1068_p7 = scmp.lt.s32.totalorder %s1062_s29, %s1062_s29 }
  0x2e   :  { %p1069_p8 = por %p1068_p7, %p1067_p6 }
  0x30   :  { %p1070_p9 = pnand %p1069_p8, %p1063_p5 }
  0x32   :  { %1073 = shalt.err (!%p1070_p9)
}
  0x33   :  { %50 = dma.hbm_to_vmem [thread:$0]  %s1351_s3, 8192, %s45_s21, [#allocation6], %s1106_s1, %s1106_s1, %s1107_s17  }
  0x34   :  { %1096 = dma.done.wait [#allocation3], 256  }
  0x35   :  { %1097 = vsyncadd [#allocation3], 4294967040 }
  0x36   :  { %1098 = dma.done.wait [#allocation6], 16384  }
  0x37   :  { %1099 = vsyncadd [#allocation6], 4294950912  ;;  %v1109_v0 = vmov 0.0   ;;  %v65_v1 = vld [vmem:[#allocation5 + $0x8] sm:$0xff]  ;;  %v67_v3 = vld [vmem:[#allocation5 + $0x18] sm:$0xff]  ;;  %s1111_s8 = smov [#allocation8]  }
  0x38   :  { %214 = vmatprep.mubr.f32.mxu0 %v1109_v0  ;;  %291 = vmatprep.mubr.f32.mxu1 %v1109_v0  ;;  %v69_v2 = vld [vmem:[#allocation5 + $0x28] sm:$0xff]  ;;  %v71_v5 = vld [vmem:[#allocation5 + $0x38] sm:$0xff]  ;;  %v64_v6 = vld [vmem:[#allocation5] sm:$0xff]  ;;  %s748_s9 = sshll.u32 %s1111_s8, 4  ;;  %s749_s9 = int_to_ptr.vmem [resolvable:$true] %s748_s9 }
  0x39   :  { %v838_v4 = vpack.c.bf16 %v69_v2, %v65_v1  ;;  %v68_v7 = vld [vmem:[#allocation5 + $0x20] sm:$0xff]  ;;  %v870_v8 = vpack.c.bf16 %v71_v5, %v67_v3  ;;  %v66_v10 = vld [vmem:[#allocation5 + $0x10] sm:$0xff]  ;;  %v73_v12 = vld [vmem:[#allocation5 + $0x48] sm:$0xff]  ;;  %p1079_p11 = scmp.lt.s32.totalorder %s749_s9, %s749_s9 }
  0x3a   :  { %v840_v9 = vpack.c.bf16 %v68_v7, %v64_v6  ;;  %v70_v11 = vld [vmem:[#allocation5 + $0x30] sm:$0xff]  ;;  %v77_v14 = vld [vmem:[#allocation5 + $0x68] sm:$0xff]  ;;  %v75_v15 = vld [vmem:[#allocation5 + $0x58] sm:$0xff] }
  0x3b   :  { %839 = vmatprep.subr.bf16.mxu0 %v838_v4  ;;  %v872_v13 = vpack.c.bf16 %v70_v11, %v66_v10  ;;  %v79_v16 = vld [vmem:[#allocation5 + $0x78] sm:$0xff]  ;;  %871 = vmatprep.subr.bf16.mxu1 %v870_v8  ;;  %v842_v17 = vpack.c.bf16 %v77_v14, %v73_v12  ;;  %v72_v19 = vld [vmem:[#allocation5 + $0x40] sm:$0xff]  ;;  %v74_v21 = vld [vmem:[#allocation5 + $0x50] sm:$0xff] }
  0x3c   :  { %841 = vmatpush1.bf16.msra.mxu0 %v840_v9  ;;  %v874_v18 = vpack.c.bf16 %v79_v16, %v75_v15  ;;  %v76_v20 = vld [vmem:[#allocation5 + $0x60] sm:$0xff]  ;;  %v78_v23 = vld [vmem:[#allocation5 + $0x70] sm:$0xff]  ;;  %v81_v24 = vld [vmem:[#allocation5 + $0x88] sm:$0xff] }
  0x3d   :  { %873 = vmatpush1.bf16.msra.mxu1 %v872_v13  ;;  %v844_v22 = vpack.c.bf16 %v76_v20, %v72_v19  ;;  %v85_v25 = vld [vmem:[#allocation5 + $0xa8] sm:$0xff]  ;;  %843 = vmatprep.subr.bf16.mxu0 %v842_v17  ;;  %v876_v26 = vpack.c.bf16 %v78_v23, %v74_v21  ;;  %v83_v28 = vld [vmem:[#allocation5 + $0x98] sm:$0xff]  ;;  %v80_v30 = vld [vmem:[#allocation5 + $0x80] sm:$0xff] }
  0x3e   :  { %875 = vmatprep.subr.bf16.mxu1 %v874_v18  ;;  %v846_v27 = vpack.c.bf16 %v85_v25, %v81_v24  ;;  %v87_v29 = vld [vmem:[#allocation5 + $0xb8] sm:$0xff]  ;;  %v84_v32 = vld [vmem:[#allocation5 + $0xa0] sm:$0xff]  ;;  %v82_v33 = vld [vmem:[#allocation5 + $0x90] sm:$0xff] }
  0x3f   :  { %v878_v31 = vpack.c.bf16 %v87_v29, %v83_v28  ;;  %v86_v34 = vld [vmem:[#allocation5 + $0xb0] sm:$0xff]  ;;  %v848_v35 = vpack.c.bf16 %v84_v32, %v80_v30  ;;  %v89_v36 = vld [vmem:[#allocation5 + $0xc8] sm:$0xff]  ;;  %v91_v38 = vld [vmem:[#allocation5 + $0xd8] sm:$0xff] }
  0x40   :  { %845 = vmatpush1.bf16.msra.mxu0 %v844_v22  ;;  %v93_v37 = vld [vmem:[#allocation5 + $0xe8] sm:$0xff]  ;;  %v880_v39 = vpack.c.bf16 %v86_v34, %v82_v33  ;;  %v95_v41 = vld [vmem:[#allocation5 + $0xf8] sm:$0xff]  ;;  %v88_v42 = vld [vmem:[#allocation5 + $0xc0] sm:$0xff] }
  0x41   :  { %877 = vmatpush1.bf16.msra.mxu1 %v876_v26  ;;  %847 = vmatprep.subr.bf16.mxu0 %v846_v27  ;;  %v850_v40 = vpack.c.bf16 %v93_v37, %v89_v36  ;;  %v92_v43 = vld [vmem:[#allocation5 + $0xe0] sm:$0xff]  ;;  %v882_v44 = vpack.c.bf16 %v95_v41, %v91_v38  ;;  %v90_v45 = vld [vmem:[#allocation5 + $0xd0] sm:$0xff]  ;;  %v97_v47 = vld [vmem:[#allocation5 + $0x108] sm:$0xff] }
  0x42   :  { %879 = vmatprep.subr.bf16.mxu1 %v878_v31  ;;  %v94_v46 = vld [vmem:[#allocation5 + $0xf0] sm:$0xff]  ;;  %v101_v48 = vld [vmem:[#allocation5 + $0x128] sm:$0xff]  ;;  %v99_v49 = vld [vmem:[#allocation5 + $0x118] sm:$0xff]  ;;  %v852_v51 = vpack.c.bf16 %v92_v43, %v88_v42 }
  0x43   :  { %v103_v50 = vld [vmem:[#allocation5 + $0x138] sm:$0xff]  ;;  %v884_v52 = vpack.c.bf16 %v94_v46, %v90_v45  ;;  %v854_v53 = vpack.c.bf16 %v101_v48, %v97_v47  ;;  %v96_v54 = vld [vmem:[#allocation5 + $0x100] sm:$0xff]  ;;  %v98_v56 = vld [vmem:[#allocation5 + $0x110] sm:$0xff] }
  0x44   :  { %849 = vmatpush1.bf16.msra.mxu0 %v848_v35  ;;  %v100_v55 = vld [vmem:[#allocation5 + $0x120] sm:$0xff]  ;;  %v886_v57 = vpack.c.bf16 %v103_v50, %v99_v49  ;;  %v102_v58 = vld [vmem:[#allocation5 + $0x130] sm:$0xff]  ;;  %v105_v59 = vld [vmem:[#allocation5 + $0x148] sm:$0xff] }
  0x45   :  { %881 = vmatpush1.bf16.msra.mxu1 %v880_v39  ;;  %851 = vmatprep.subr.bf16.mxu0 %v850_v40  ;;  %v109_v60 = vld [vmem:[#allocation5 + $0x168] sm:$0xff]  ;;  %v107_v61 = vld [vmem:[#allocation5 + $0x158] sm:$0xff]  ;;  %v856_v63 = vpack.c.bf16 %v100_v55, %v96_v54  ;;  %v888_v1 = vpack.c.bf16 %v102_v58, %v98_v56  ;;  %v104_v3 = vld [vmem:[#allocation5 + $0x140] sm:$0xff] }
  0x46   :  { %883 = vmatprep.subr.bf16.mxu1 %v882_v44  ;;  %v111_v62 = vld [vmem:[#allocation5 + $0x178] sm:$0xff]  ;;  %v858_v2 = vpack.c.bf16 %v109_v60, %v105_v59  ;;  %v108_v4 = vld [vmem:[#allocation5 + $0x160] sm:$0xff]  ;;  %v106_v5 = vld [vmem:[#allocation5 + $0x150] sm:$0xff] }
  0x47   :  { %v890_v6 = vpack.c.bf16 %v111_v62, %v107_v61  ;;  %v110_v7 = vld [vmem:[#allocation5 + $0x170] sm:$0xff]  ;;  %v113_v8 = vld [vmem:[#allocation5 + $0x188] sm:$0xff]  ;;  %v115_v10 = vld [vmem:[#allocation5 + $0x198] sm:$0xff]  ;;  %v860_v12 = vpack.c.bf16 %v108_v4, %v104_v3 }
  0x48   :  { %853 = vmatpush1.bf16.msra.mxu0 %v852_v51  ;;  %v117_v9 = vld [vmem:[#allocation5 + $0x1a8] sm:$0xff]  ;;  %v119_v11 = vld [vmem:[#allocation5 + $0x1b8] sm:$0xff]  ;;  %v892_v13 = vpack.c.bf16 %v110_v7, %v106_v5  ;;  %v112_v15 = vld [vmem:[#allocation5 + $0x180] sm:$0xff] }
  0x49   :  { %885 = vmatpush1.bf16.msra.mxu1 %v884_v52  ;;  %855 = vmatprep.subr.bf16.mxu0 %v854_v53  ;;  %v862_v14 = vpack.c.bf16 %v117_v9, %v113_v8  ;;  %v116_v16 = vld [vmem:[#allocation5 + $0x1a0] sm:$0xff]  ;;  %v114_v17 = vld [vmem:[#allocation5 + $0x190] sm:$0xff]  ;;  %v894_v18 = vpack.c.bf16 %v119_v11, %v115_v10  ;;  %v121_v20 = vld [vmem:[#allocation5 + $0x1c8] sm:$0xff] }
  0x4a   :  { %887 = vmatprep.subr.bf16.mxu1 %v886_v57  ;;  %v118_v19 = vld [vmem:[#allocation5 + $0x1b0] sm:$0xff]  ;;  %v125_v21 = vld [vmem:[#allocation5 + $0x1e8] sm:$0xff]  ;;  %v123_v22 = vld [vmem:[#allocation5 + $0x1d8] sm:$0xff]  ;;  %v864_v24 = vpack.c.bf16 %v116_v16, %v112_v15 }
  0x4b   :  { %v127_v23 = vld [vmem:[#allocation5 + $0x1f8] sm:$0xff]  ;;  %v896_v25 = vpack.c.bf16 %v118_v19, %v114_v17  ;;  %v866_v26 = vpack.c.bf16 %v125_v21, %v121_v20  ;;  %v120_v27 = vld [vmem:[#allocation5 + $0x1c0] sm:$0xff]  ;;  %v122_v30 = vld [vmem:[#allocation5 + $0x1d0] sm:$0xff] }
  0x4c   :  { %857 = vmatpush1.bf16.msra.mxu0 %v856_v63  ;;  %v124_v28 = vld [vmem:[#allocation5 + $0x1e0] sm:$0xff]  ;;  %v898_v29 = vpack.c.bf16 %v127_v23, %v123_v22  ;;  %v126_v31 = vld [vmem:[#allocation5 + $0x1f0] sm:$0xff]  ;;  %v63_v35 = vld [vmem:[#allocation2 + $0x8] sm:$0xff] }
  0x4d   :  { %889 = vmatpush1.bf16.msra.mxu1 %v888_v1  ;;  %859 = vmatprep.subr.bf16.mxu0 %v858_v2  ;;  %v868_v32 = vpack.c.bf16 %v124_v28, %v120_v27  ;;  %v900_v33 = vpack.c.bf16 %v126_v31, %v122_v30  ;;  %v62_v34 = vld [vmem:[#allocation2] sm:$0xff]  ;;  %v536_v36 = vld [vmem:[#allocation7 + $0x80] sm:$0xff]  ;;  %v537_v37 = vld [vmem:[#allocation7 + $0x88] sm:$0xff] }
  0x4e   :  { %891 = vmatprep.subr.bf16.mxu1 %v890_v6  ;;  %v568_v38 = vld [vmem:[#allocation7 + $0x180] sm:$0xff]  ;;  %v902_v39 = vpack.c.bf16 %v537_v37, %v536_v36  ;;  %v569_v40 = vld [vmem:[#allocation7 + $0x188] sm:$0xff]  ;;  %v538_v48 = vld [vmem:[#allocation7 + $0x90] sm:$0xff] }
  0x4f   :  { %v520_v41 = vld [vmem:[#allocation7] sm:$0xff]  ;;  %v521_v42 = vld [vmem:[#allocation7 + $0x8] sm:$0xff]  ;;  %v934_v43 = vpack.c.bf16 %v569_v40, %v568_v38  ;;  %v539_v49 = vld [vmem:[#allocation7 + $0x98] sm:$0xff] }
  0x50   :  { %861 = vmatpush1.bf16.msra.mxu0 %v860_v12  ;;  %v904_v44 = vpack.c.bf16 %v521_v42, %v520_v41  ;;  %v552_v45 = vld [vmem:[#allocation7 + $0x100] sm:$0xff]  ;;  %v553_v46 = vld [vmem:[#allocation7 + $0x108] sm:$0xff]  ;;  %v906_v50 = vpack.c.bf16 %v539_v49, %v538_v48  ;;  %v571_v51 = vld [vmem:[#allocation7 + $0x198] sm:$0xff] }
  0x51   :  { %893 = vmatpush1.bf16.msra.mxu1 %v892_v13  ;;  %863 = vmatprep.subr.bf16.mxu0 %v862_v14  ;;  %v936_v47 = vpack.c.bf16 %v553_v46, %v552_v45  ;;  %v522_v52 = vld [vmem:[#allocation7 + $0x10] sm:$0xff]  ;;  %v523_v53 = vld [vmem:[#allocation7 + $0x18] sm:$0xff]  ;;  %v540_v59 = vld [vmem:[#allocation7 + $0xa0] sm:$0xff] }
  0x52   :  { %895 = vmatprep.subr.bf16.mxu1 %v894_v18  ;;  %v908_v55 = vpack.c.bf16 %v523_v53, %v522_v52  ;;  %v554_v56 = vld [vmem:[#allocation7 + $0x110] sm:$0xff]  ;;  %v555_v57 = vld [vmem:[#allocation7 + $0x118] sm:$0xff]  ;;  %v541_v60 = vld [vmem:[#allocation7 + $0xa8] sm:$0xff] }
  0x53   :  { %v940_v58 = vpack.c.bf16 %v555_v57, %v554_v56  ;;  %v572_v61 = vld [vmem:[#allocation7 + $0x1a0] sm:$0xff]  ;;  %v910_v62 = vpack.c.bf16 %v541_v60, %v540_v59  ;;  %v573_v63 = vld [vmem:[#allocation7 + $0x1a8] sm:$0xff]  ;;  %v542_v8 = vld [vmem:[#allocation7 + $0xb0] sm:$0xff] }
  0x54   :  { %865 = vmatpush1.bf16.msra.mxu0 %v864_v24  ;;  %v524_v1 = vld [vmem:[#allocation7 + $0x20] sm:$0xff]  ;;  %v525_v2 = vld [vmem:[#allocation7 + $0x28] sm:$0xff]  ;;  %v942_v3 = vpack.c.bf16 %v573_v63, %v572_v61  ;;  %v543_v9 = vld [vmem:[#allocation7 + $0xb8] sm:$0xff] }
  0x55   :  { %897 = vmatpush1.bf16.msra.mxu1 %v896_v25  ;;  %867 = vmatprep.subr.bf16.mxu0 %v866_v26  ;;  %v912_v4 = vpack.c.bf16 %v525_v2, %v524_v1  ;;  %v556_v5 = vld [vmem:[#allocation7 + $0x120] sm:$0xff]  ;;  %v557_v6 = vld [vmem:[#allocation7 + $0x128] sm:$0xff]  ;;  %v574_v10 = vld [vmem:[#allocation7 + $0x1b0] sm:$0xff]  ;;  %v914_v11 = vpack.c.bf16 %v543_v9, %v542_v8 }
  0x56   :  { %899 = vmatprep.subr.bf16.mxu1 %v898_v29  ;;  %v944_v7 = vpack.c.bf16 %v557_v6, %v556_v5  ;;  %v575_v12 = vld [vmem:[#allocation7 + $0x1b8] sm:$0xff]  ;;  %v526_v13 = vld [vmem:[#allocation7 + $0x30] sm:$0xff]  ;;  %v544_v19 = vld [vmem:[#allocation7 + $0xc0] sm:$0xff] }
  0x57   :  { %v527_v14 = vld [vmem:[#allocation7 + $0x38] sm:$0xff]  ;;  %v946_v15 = vpack.c.bf16 %v575_v12, %v574_v10  ;;  %v558_v17 = vld [vmem:[#allocation7 + $0x130] sm:$0xff]  ;;  %v545_v21 = vld [vmem:[#allocation7 + $0xc8] sm:$0xff] }
  0x58   :  { %869 = vmatpush1.bf16.msra.mxu0 %v868_v32  ;;  %v916_v16 = vpack.c.bf16 %v527_v14, %v526_v13  ;;  %v559_v18 = vld [vmem:[#allocation7 + $0x138] sm:$0xff]  ;;  %v576_v22 = vld [vmem:[#allocation7 + $0x1c0] sm:$0xff]  ;;  %v577_v23 = vld [vmem:[#allocation7 + $0x1c8] sm:$0xff]  ;;  %v918_v24 = vpack.c.bf16 %v545_v21, %v544_v19 }
  0x59   :  { %901 = vmatpush1.bf16.msra.mxu1 %v900_v33  ;;  %903 = vmatprep.subr.bf16.mxu0 %v902_v39  ;;  %v948_v20 = vpack.c.bf16 %v559_v18, %v558_v17  ;;  %v950_v25 = vpack.c.bf16 %v577_v23, %v576_v22  ;;  %v528_v26 = vld [vmem:[#allocation7 + $0x40] sm:$0xff]  ;;  %v529_v27 = vld [vmem:[#allocation7 + $0x48] sm:$0xff]  ;;  %v546_v31 = vld [vmem:[#allocation7 + $0xd0] sm:$0xff] }
  0x5a   :  { %935 = vmatprep.subr.bf16.mxu1 %v934_v43  ;;  %v560_v28 = vld [vmem:[#allocation7 + $0x140] sm:$0xff]  ;;  %v920_v29 = vpack.c.bf16 %v529_v27, %v528_v26  ;;  %v561_v30 = vld [vmem:[#allocation7 + $0x148] sm:$0xff]  ;;  %v547_v32 = vld [vmem:[#allocation7 + $0xd8] sm:$0xff] }
  0x5b   :  { %215 = vmatmul.mubr.f32.vlgmr.msra.gmra.mrb[0].mxu0 %v62_v34  ;;  %v952_v33 = vpack.c.bf16 %v561_v30, %v560_v28  ;;  %v579_v36 = vld [vmem:[#allocation7 + $0x1d8] sm:$0xff]  ;;  %v530_v37 = vld [vmem:[#allocation7 + $0x50] sm:$0xff]  ;;  %v548_v43 = vld [vmem:[#allocation7 + $0xe0] sm:$0xff] }
  0x5c   :  { %292 = vmatmul.mubr.f32.vlgmr.msra.gmra.mrb[0].mxu1 %v62_v34  ;;  %220 = vmatprep.mubr.f32.mxu0 %v1109_v0  ;;  %v922_v34 = vpack.c.bf16 %v547_v32, %v546_v31  ;;  %v531_v39 = vld [vmem:[#allocation7 + $0x58] sm:$0xff]  ;;  %v562_v40 = vld [vmem:[#allocation7 + $0x150] sm:$0xff]  ;;  %v580_v45 = vld [vmem:[#allocation7 + $0x1e0] sm:$0xff] }
  0x5d   :  { %297 = vmatprep.mubr.f32.mxu1 %v1109_v0  ;;  %905 = vmatpush3.bf16.msra.mxu0 %v904_v44  ;;  %v570_v0 = vld [vmem:[#allocation7 + $0x190] sm:$0xff]  ;;  %v563_v41 = vld [vmem:[#allocation7 + $0x158] sm:$0xff]  ;;  %v924_v42 = vpack.c.bf16 %v531_v39, %v530_v37  ;;  %v549_v44 = vld [vmem:[#allocation7 + $0xe8] sm:$0xff] }
  0x5e   :  { %937 = vmatpush3.bf16.msra.mxu1 %v936_v47  ;;  %v938_v54 = vpack.c.bf16 %v571_v51, %v570_v0  ;;  %907 = vmatprep.subr.bf16.mxu0 %v906_v50  ;;  %v956_v46 = vpack.c.bf16 %v563_v41, %v562_v40  ;;  %v926_v47 = vpack.c.bf16 %v549_v44, %v548_v43  ;;  %v581_v48 = vld [vmem:[#allocation7 + $0x1e8] sm:$0xff]  ;;  %v532_v49 = vld [vmem:[#allocation7 + $0x60] sm:$0xff]  ;;  %v550_v53 = vld [vmem:[#allocation7 + $0xf0] sm:$0xff] }
  0x5f   :  { %221 = vmatmul.mubr.f32.gmra.mrb[2].mxu0 %v63_v35  ;;  %v533_v0 = vld [vmem:[#allocation7 + $0x68] sm:$0xff]  ;;  %v958_v50 = vpack.c.bf16 %v581_v48, %v580_v45  ;;  %v564_v51 = vld [vmem:[#allocation7 + $0x160] sm:$0xff]  ;;  %v583_v56 = vld [vmem:[#allocation7 + $0x1f8] sm:$0xff] }
  0x60   :  { %298 = vmatmul.mubr.f32.gmra.mrb[2].mxu1 %v63_v35  ;;  %939 = vmatprep.subr.bf16.mxu1 %v938_v54  ;;  %v578_v35 = vld [vmem:[#allocation7 + $0x1d0] sm:$0xff]  ;;  %v565_v52 = vld [vmem:[#allocation7 + $0x168] sm:$0xff]  ;;  %v551_v54 = vld [vmem:[#allocation7 + $0xf8] sm:$0xff]  ;;  %v928_v57 = vpack.c.bf16 %v533_v0, %v532_v49 }
  0x61   :  { %909 = vmatpush3.bf16.msra.mxu0 %v908_v55  ;;  %v954_v38 = vpack.c.bf16 %v579_v36, %v578_v35  ;;  %v582_v55 = vld [vmem:[#allocation7 + $0x1f0] sm:$0xff]  ;;  %v930_v59 = vpack.c.bf16 %v551_v54, %v550_v53  ;;  %v535_v61 = vld [vmem:[#allocation7 + $0x78] sm:$0xff] }
  0x62   :  { %941 = vmatpush3.bf16.msra.mxu1 %v940_v58  ;;  %911 = vmatprep.subr.bf16.mxu0 %v910_v62  ;;  %v960_v58 = vpack.c.bf16 %v565_v52, %v564_v51  ;;  %v534_v60 = vld [vmem:[#allocation7 + $0x70] sm:$0xff]  ;;  %v962_v62 = vpack.c.bf16 %v583_v56, %v582_v55  ;;  %v567_v1 = vld [vmem:[#allocation7 + $0x178] sm:$0xff]  ;;  %v1110_v56 = vmov 1.0  }
  0x63   :  { %943 = vmatprep.subr.bf16.mxu1 %v942_v3  ;;  %v566_v63 = vld [vmem:[#allocation7 + $0x170] sm:$0xff]  ;;  %v932_v2 = vpack.c.bf16 %v535_v61, %v534_v60 }
  0x64   :  { %v964_v3 = vpack.c.bf16 %v567_v1, %v566_v63 }
  0x65   :  { %913 = vmatpush3.bf16.msra.mxu0 %v912_v4  ;;  %v130_v4 = vlaneseq }
  0x66   :  { %945 = vmatpush3.bf16.msra.mxu1 %v944_v7  ;;  %915 = vmatprep.subr.bf16.mxu0 %v914_v11  ;;  %v128_v7 = vld [vmem:[%s1350_s2] sm:$0xf] }
  0x67   :  { %947 = vmatprep.subr.bf16.mxu1 %v946_v15  ;;  %v131_v5 = vshrl.u32 %v130_v4, 7 }
  0x69   :  { %917 = vmatpush3.bf16.msra.mxu0 %v916_v16  ;;  %v132_v6 = vsub.s32 0, %v131_v5  ;;  %v140_v8 = vsub.s32 2, %v131_v5  ;;  %v136_v9 = vsub.s32 1, %v131_v5  ;;  %v144_v10 = vsub.s32 3, %v131_v5 }
  0x6a   :  { %949 = vmatpush3.bf16.msra.mxu1 %v948_v20  ;;  %919 = vmatprep.subr.bf16.mxu0 %v918_v24 }
  0x6b   :  { %951 = vmatprep.subr.bf16.mxu1 %v950_v25  ;;  %v133_v11 = vrot.slane %v128_v7, %v132_v6  ;;  %v141_v12 = vrot.slane %v128_v7, %v140_v8  ;;  %v137_v13 = vrot.slane %v128_v7, %v136_v9  ;;  %v145_v14 = vrot.slane %v128_v7, %v144_v10 }
  0x6d   :  { %921 = vmatpush3.bf16.msra.mxu0 %v920_v29 }
  0x6e   :  { %953 = vmatpush3.bf16.msra.mxu1 %v952_v33  ;;  %923 = vmatprep.subr.bf16.mxu0 %v922_v34 }
  0x6f   :  { %955 = vmatprep.subr.bf16.mxu1 %v954_v38 }
  0x71   :  { %925 = vmatpush3.bf16.msra.mxu0 %v924_v42 }
  0x72   :  { %957 = vmatpush3.bf16.msra.mxu1 %v956_v46  ;;  %927 = vmatprep.subr.bf16.mxu0 %v926_v47 }
  0x73   :  { %959 = vmatprep.subr.bf16.mxu1 %v958_v50 }
  0x75   :  { %929 = vmatpush3.bf16.msra.mxu0 %v928_v57 }
  0x76   :  { %961 = vmatpush3.bf16.msra.mxu1 %v960_v58  ;;  %931 = vmatprep.subr.bf16.mxu0 %v930_v59 }
  0x77   :  { %963 = vmatprep.subr.bf16.mxu1 %v962_v62 }
  0x79   :  { %933 = vmatpush3.bf16.msra.mxu0 %v932_v2 }
  0x7a   :  { %965 = vmatpush3.bf16.msra.mxu1 %v964_v3 }
 0x12e   :  { %v216_v15 = vpop.f32.mrb[0].mxu0 }
 0x12f   :  { %v217_v16 = vadd.f32 %v216_v15, %v133_v11  ;;  %v293_v17 = vpop.f32.mrb[0].mxu1  ;;  %v218_v18 = vpop.f32.mrb[1].mxu0 }
 0x130   :  { %v1191_v19 = vadd.f32 %v293_v17, %v141_v12  ;;  %v219_v20 = vadd.f32 %v218_v18, %v137_v13  ;;  %v295_v21 = vpop.f32.mrb[1].mxu1 }
 0x131   :  { %v312_v22 = vmul.f32 0.70710677, %v217_v16  ;;  %v1193_v23 = vadd.f32 %v295_v21, %v145_v14  ;;  %v1223_v53 = vmul.f32 0.5, %v217_v16 }
 0x132   :  { %v1196_v24 = vmul.f32 0.70710677, %v1191_v19  ;;  %v1198_v25 = vmul.f32 0.70710677, %v219_v20  ;;  %v222_v29 = vpop.f32.mrb[2].mxu0  ;;  %v1225_v54 = vmul.f32 0.5, %v219_v20 }
 0x133   :  { %v336_v26 = vand.u32 2147483647, %v312_v22  ;;  %v1201_v27 = vmul.f32 0.70710677, %v1193_v23  ;;  %v299_v31 = vpop.f32.mrb[2].mxu1  ;;  %v224_v32 = vpop.f32.mrb[3].mxu0  ;;  %v1206_v44 = vadd.f32 %v222_v29, %v133_v11 }
 0x134   :  { %v338_v28 = vand.u32 2147483647, %v1196_v24  ;;  %v337_v34 = vand.u32 2147483647, %v1198_v25  ;;  %v301_v35 = vpop.f32.mrb[3].mxu1  ;;  %v1208_v45 = vadd.f32 %v299_v31, %v141_v12  ;;  %v1210_v46 = vadd.f32 %v224_v32, %v137_v13 }
 0x135   :  { %v344_v30 = vmul.f32 0.3275911, %v336_v26  ;;  %v339_v37 = vand.u32 2147483647, %v1201_v27  ;;  %v448_v42 = vmul.f32 %v336_v26, %v336_v26  ;;  %v1213_v47 = vmul.f32 0.70710677, %v1206_v44 }
 0x136   :  { %v346_v33 = vmul.f32 0.3275911, %v338_v28  ;;  %v345_v39 = vmul.f32 0.3275911, %v337_v34  ;;  %vm320_vm0 = vcmp.lt.f32.partialorder %v312_v22, 0.0  ;;  %v450_v48 = vmul.f32 %v338_v28, %v338_v28 }
 0x137   :  { %v352_v36 = vadd.f32 1.0, %v344_v30  ;;  %v347_v40 = vmul.f32 0.3275911, %v339_v37  ;;  %v1216_v49 = vmul.f32 0.70710677, %v1208_v45  ;;  %v456_v0 = vsub.f32 0.0, %v448_v42 }
 0x138   :  { %v354_v38 = vadd.f32 1.0, %v346_v33  ;;  %v353_v41 = vadd.f32 1.0, %v345_v39  ;;  %v340_v50 = vand.u32 2147483647, %v1213_v47  ;;  %v1220_v51 = vmul.f32 0.70710677, %v1210_v46 }
 0x139   :  { %976 = vrcp.f32 %v352_v36  ;;  %v355_v43 = vadd.f32 1.0, %v347_v40  ;;  %v342_v52 = vand.u32 2147483647, %v1216_v49  ;;  %v1228_v57 = vsel %vm320_vm0, -1.0, %v1110_v56 }
 0x13a   :  { %978 = vrcp.f32 %v354_v38  ;;  %v348_v55 = vmul.f32 0.3275911, %v340_v50  ;;  %v449_v58 = vmul.f32 %v337_v34, %v337_v34  ;;  %v341_v60 = vand.u32 2147483647, %v1220_v51 }
 0x13b   :  { %980 = vrcp.f32 %v353_v41  ;;  %v350_v59 = vmul.f32 0.3275911, %v342_v52  ;;  %v464_v62 = vmul.f32 1.442695, %v456_v0  ;;  %vm322_vm1 = vcmp.lt.f32.partialorder %v1196_v24, 0.0 }
 0x13c   :  { %982 = vrcp.f32 %v355_v43  ;;  %v458_v63 = vsub.f32 0.0, %v450_v48  ;;  %v356_v1 = vadd.f32 1.0, %v348_v55  ;;  %v349_v5 = vmul.f32 0.3275911, %v341_v60 }
 0x13d   :  { %v358_v4 = vadd.f32 1.0, %v350_v59  ;;  %v1237_v6 = vadd.f32 %v301_v35, %v145_v14  ;;  %vm321_vm2 = vcmp.lt.f32.partialorder %v1198_v25, 0.0  ;;  %v451_v8 = vmul.f32 %v339_v37, %v339_v37 }
 0x13e   :  { %984 = vrcp.f32 %v356_v1  ;;  %v457_v10 = vsub.f32 0.0, %v449_v58  ;;  %v357_v11 = vadd.f32 1.0, %v349_v5  ;;  %v468_v15 = vmul.f32 1.442695, %v458_v63 }
 0x13f   :  { %986 = vrcp.f32 %v358_v4  ;;  %v452_v16 = vmul.f32 %v340_v50, %v340_v50  ;;  %v454_v14 = vmul.f32 %v342_v52, %v342_v52  ;;  %v1245_v18 = vmul.f32 0.70710677, %v1237_v6 }
 0x140   :  { %988 = vpow2.f32 %v464_v62  ;;  %v1253_v22 = vsel %vm322_vm1, -1.0, %v1110_v56  ;;  %v459_v28 = vsub.f32 0.0, %v451_v8  ;;  %v466_v30 = vmul.f32 1.442695, %v457_v10 }
 0x141   :  { %990 = vrcp.f32 %v357_v11  ;;  %v453_v31 = vmul.f32 %v341_v60, %v341_v60  ;;  %v343_v32 = vand.u32 2147483647, %v1245_v18  ;;  %v460_v34 = vsub.f32 0.0, %v452_v16 }
 0x142   :  { %992 = vpow2.f32 %v468_v15  ;;  %v462_v37 = vsub.f32 0.0, %v454_v14  ;;  %v1263_v40 = vsel %vm321_vm2, -1.0, %v1110_v56  ;;  %v470_v41 = vmul.f32 1.442695, %v459_v28 }
 0x143   :  { %v1231_v61 = vpop.eup %976  ;;  %v351_v38 = vmul.f32 0.3275911, %v343_v32  ;;  %v461_v48 = vsub.f32 0.0, %v453_v31  ;;  %994 = vpow2.f32 %v466_v30  ;;  %v472_v58 = vmul.f32 1.442695, %v460_v34 }
 0x144   :  { %v1234_v2 = vpop.eup %978  ;;  %v376_v3 = vmul.f32 1.0614054, %v1231_v61  ;;  %v476_v25 = vmul.f32 1.442695, %v462_v37  ;;  %v455_v30 = vmul.f32 %v343_v32, %v343_v32  ;;  %vm323_vm3 = vcmp.lt.f32.partialorder %v1201_v27, 0.0 }
 0x145   :  { %v378_v7 = vmul.f32 1.0614054, %v1234_v2  ;;  %v1241_v12 = vpop.eup %980  ;;  %v359_v0 = vadd.f32 1.0, %v351_v38  ;;  %vm324_vm4 = vcmp.lt.f32.partialorder %v1213_v47, 0.0  ;;  %vm325_vm5 = vcmp.lt.f32.partialorder %v1220_v51, 0.0 }
 0x146   :  { %v384_v9 = vadd.f32 -1.4531521, %v376_v3  ;;  %v377_v20 = vmul.f32 1.0614054, %v1241_v12  ;;  %v1248_v21 = vpop.eup %982  ;;  %vm326_vm6 = vcmp.lt.f32.partialorder %v1216_v49, 0.0  ;;  %vm327_vm7 = vcmp.lt.f32.partialorder %v1245_v18, 0.0 }
 0x147   :  { %v386_v13 = vadd.f32 -1.4531521, %v378_v7  ;;  %v379_v24 = vmul.f32 1.0614054, %v1248_v21  ;;  %996 = vrcp.f32 %v359_v0 }
 0x148   :  { %v392_v17 = vmul.f32 %v1231_v61, %v384_v9  ;;  %v385_v35 = vadd.f32 -1.4531521, %v377_v20  ;;  %v1266_v52 = vpop.eup %984  ;;  %998 = vpow2.f32 %v470_v41  ;;  %v474_v9 = vmul.f32 1.442695, %v461_v48 }
 0x149   :  { %v394_v26 = vmul.f32 %v1234_v2, %v386_v13  ;;  %v387_v50 = vadd.f32 -1.4531521, %v379_v24  ;;  %v1268_v60 = vpop.eup %986  ;;  %v380_v5 = vmul.f32 1.0614054, %v1266_v52  ;;  %1000 = vpow2.f32 %v472_v58 }
 0x14a   :  { %v400_v29 = vadd.f32 1.4214138, %v392_v17  ;;  %v393_v42 = vmul.f32 %v1241_v12, %v385_v35  ;;  %v989_v1 = vpop.eup %988  ;;  %v382_v7 = vmul.f32 1.0614054, %v1268_v60  ;;  %1002 = vpow2.f32 %v476_v25 }
 0x14b   :  { %v402_v33 = vadd.f32 1.4214138, %v394_v26  ;;  %v395_v63 = vmul.f32 %v1248_v21, %v387_v50  ;;  %v1276_v11 = vpop.eup %990  ;;  %v388_v16 = vadd.f32 -1.4531521, %v380_v5  ;;  %1004 = vpow2.f32 %v474_v9 }
 0x14c   :  { %v408_v36 = vmul.f32 %v1231_v61, %v400_v29  ;;  %v401_v59 = vadd.f32 1.4214138, %v393_v42  ;;  %v381_v20 = vmul.f32 1.0614054, %v1276_v11  ;;  %v390_v26 = vadd.f32 -1.4531521, %v382_v7  ;;  %v993_v28 = vpop.eup %992 }
 0x14d   :  { %v410_v39 = vmul.f32 %v1234_v2, %v402_v33  ;;  %v403_v10 = vadd.f32 1.4214138, %v395_v63  ;;  %v396_v33 = vmul.f32 %v1266_v52, %v388_v16  ;;  %v995_v32 = vpop.eup %994  ;;  %v463_v50 = vsub.f32 0.0, %v455_v30 }
 0x14e   :  { %v416_v43 = vadd.f32 -0.28449672, %v408_v36  ;;  %v409_v4 = vmul.f32 %v1241_v12, %v401_v59  ;;  %v389_v36 = vadd.f32 -1.4531521, %v381_v20  ;;  %v398_v37 = vmul.f32 %v1268_v60, %v390_v26 }
 0x14f   :  { %v418_v55 = vadd.f32 -0.28449672, %v410_v39  ;;  %v411_v14 = vmul.f32 %v1248_v21, %v403_v10  ;;  %v404_v24 = vadd.f32 1.4214138, %v396_v33  ;;  %v331_v9 = vsel %vm323_vm3, -1.0, %v1110_v56 }
 0x150   :  { %v424_v62 = vmul.f32 %v1231_v61, %v416_v43  ;;  %v417_v15 = vadd.f32 -0.28449672, %v409_v4  ;;  %v397_v42 = vmul.f32 %v1276_v11, %v389_v36  ;;  %v478_v16 = vmul.f32 1.442695, %v463_v50 }
 0x151   :  { %v426_v3 = vmul.f32 %v1234_v2, %v418_v55  ;;  %v419_v35 = vadd.f32 -0.28449672, %v411_v14  ;;  %v412_v48 = vmul.f32 %v1266_v52, %v404_v24  ;;  %v1290_v0 = vpop.eup %996 }
 0x152   :  { %v432_v8 = vadd.f32 0.2548296, %v424_v62  ;;  %v425_v31 = vmul.f32 %v1241_v12, %v417_v15  ;;  %v405_v58 = vadd.f32 1.4214138, %v397_v42  ;;  %v383_v63 = vmul.f32 1.0614054, %v1290_v0 }
 0x153   :  { %v434_v13 = vadd.f32 0.2548296, %v426_v3  ;;  %v427_v41 = vmul.f32 %v1248_v21, %v419_v35  ;;  %v999_v3 = vpop.eup %998  ;;  %1006 = vpow2.f32 %v478_v16 }
 0x154   :  { %v440_v17 = vmul.f32 %v1231_v61, %v432_v8  ;;  %v433_v61 = vadd.f32 0.2548296, %v425_v31  ;;  %v1001_v8 = vpop.eup %1000 }
 0x155   :  { %v442_v29 = vmul.f32 %v1234_v2, %v434_v13  ;;  %v406_v2 = vadd.f32 1.4214138, %v398_v37  ;;  %v435_v55 = vadd.f32 0.2548296, %v427_v41  ;;  %v391_v13 = vadd.f32 -1.4531521, %v383_v63  ;;  %v1003_v33 = vpop.eup %1002 }
 0x156   :  { %v480_v34 = vmul.f32 %v989_v1, %v440_v17  ;;  %v441_v43 = vmul.f32 %v1241_v12, %v433_v61  ;;  %v420_v1 = vadd.f32 -0.28449672, %v412_v48  ;;  %v413_v12 = vmul.f32 %v1276_v11, %v405_v58 }
 0x157   :  { %v482_v38 = vmul.f32 %v993_v28, %v442_v29  ;;  %v414_v59 = vmul.f32 %v1268_v60, %v406_v2  ;;  %v443_v5 = vmul.f32 %v1248_v21, %v435_v55  ;;  %v399_v26 = vmul.f32 %v1290_v0, %v391_v13 }
 0x158   :  { %v488_v39 = vsub.f32 1.0, %v480_v34  ;;  %v481_v25 = vmul.f32 %v995_v32, %v441_v43  ;;  %v428_v15 = vmul.f32 %v1266_v52, %v420_v1  ;;  %v421_v14 = vadd.f32 -0.28449672, %v413_v12 }
 0x159   :  { %v490_v62 = vsub.f32 1.0, %v482_v38  ;;  %v422_v7 = vadd.f32 -0.28449672, %v414_v59  ;;  %v483_v17 = vmul.f32 %v999_v3, %v443_v5  ;;  %v407_v35 = vadd.f32 1.4214138, %v399_v26  ;;  %v1005_v38 = vpop.eup %1004 }
 0x15a   :  { %v496_v4 = vmul.f32 %v488_v39, %v1228_v57  ;;  %v489_v10 = vsub.f32 1.0, %v481_v25  ;;  %v436_v28 = vadd.f32 0.2548296, %v428_v15  ;;  %v429_v27 = vmul.f32 %v1276_v11, %v421_v14 }
 0x15b   :  { %v430_v20 = vmul.f32 %v1268_v60, %v422_v7  ;;  %v498_v57 = vmul.f32 %v490_v62, %v1253_v22  ;;  %v491_v30 = vsub.f32 1.0, %v483_v17  ;;  %v415_v39 = vmul.f32 %v1290_v0, %v407_v35 }
 0x15c   :  { %v497_v21 = vmul.f32 %v489_v10, %v1263_v40  ;;  %v504_v29 = vadd.f32 1.0, %v496_v4  ;;  %v444_v36 = vmul.f32 %v1266_v52, %v436_v28  ;;  %v437_v22 = vadd.f32 0.2548296, %v429_v27 }
 0x15d   :  { %v438_v31 = vadd.f32 0.2548296, %v430_v20  ;;  %v499_v37 = vmul.f32 %v491_v30, %v331_v9  ;;  %v506_v61 = vadd.f32 1.0, %v498_v57  ;;  %v307_v2 = vmul.f32 0.5, %v1193_v23  ;;  %v1007_v1 = vpop.eup %1006  ;;  %v761_v20 = vld [vmem:[%s1352_s4] ss:$0 sm:$0xff] }
 0x15e   :  { %v505_v34 = vadd.f32 1.0, %v497_v21  ;;  %v484_v41 = vmul.f32 %v1001_v8, %v444_v36  ;;  %v512_v42 = vmul.f32 %v504_v29, %v1223_v53  ;;  %v445_v43 = vmul.f32 %v1276_v11, %v437_v22  ;;  %s1074_s4 = scalar_lea.vmem %s749_s9, 256 }
 0x15f   :  { %v446_v40 = vmul.f32 %v1268_v60, %v438_v31  ;;  %v507_v32 = vadd.f32 1.0, %v499_v37  ;;  %v306_v52 = vmul.f32 0.5, %v1191_v19  ;;  %v332_v60 = vsel %vm324_vm4, -1.0, %v1110_v56  ;;  %p1075_p10 = scmp.ne.s32.totalorder %s749_s9, %s1074_s4  ;;  %p1080_p12 = scmp.lt.s32.totalorder %s1074_s4, %s1074_s4 }
 0x160   :  { %v513_v24 = vmul.f32 %v505_v34, %v1225_v54  ;;  %v423_v48 = vadd.f32 -0.28449672, %v415_v39  ;;  %v492_v50 = vsub.f32 1.0, %v484_v41  ;;  %v485_v55 = vmul.f32 %v1005_v38, %v445_v43 }
 0x161   :  { %v515_v54 = vmul.f32 %v507_v32, %v307_v2  ;;  %v486_v53 = vmul.f32 %v1003_v33, %v446_v40  ;;  %v514_v58 = vmul.f32 %v506_v61, %v306_v52  ;;  %v333_v19 = vsel %vm325_vm5, -1.0, %v1110_v56  ;;  %p1081_p13 = por %p1080_p12, %p1079_p11 }
 0x162   :  { %655 = vmatprep.mubr.f32.mxu0 %v513_v24  ;;  %v431_v23 = vmul.f32 %v1290_v0, %v423_v48  ;;  %v500_v59 = vmul.f32 %v492_v50, %v332_v60  ;;  %v493_v11 = vsub.f32 1.0, %v485_v55  ;;  %v309_v3 = vmul.f32 0.5, %v1210_v46 }
 0x163   :  { %656 = vmatmul.mubr.f32.vlgmr.msra.gmra.mrb[4].mxu0 %v512_v42  ;;  %730 = vmatprep.mubr.f32.mxu1 %v515_v54  ;;  %v494_v25 = vsub.f32 1.0, %v486_v53  ;;  %v308_v5 = vmul.f32 0.5, %v1206_v44  ;;  %v334_v12 = vsel %vm326_vm6, -1.0, %v1110_v56  ;;  %v335_v13 = vsel %vm327_vm7, -1.0, %v1110_v56  ;;  %p1082_p0 = pnand %p1081_p13, %p1075_p10 }
 0x164   :  { %731 = vmatmul.mubr.f32.vlgmr.msra.gmra.mrb[4].mxu1 %v514_v58  ;;  %v439_v47 = vadd.f32 0.2548296, %v431_v23  ;;  %v501_v62 = vmul.f32 %v493_v11, %v333_v19  ;;  %v508_v63 = vadd.f32 1.0, %v500_v59  ;;  %v311_v46 = vmul.f32 0.5, %v1237_v6 }
 0x165   :  { %v502_v9 = vmul.f32 %v494_v25, %v334_v12  ;;  %v310_v44 = vmul.f32 0.5, %v1208_v45 }
 0x166   :  { %v447_v51 = vmul.f32 %v1290_v0, %v439_v47  ;;  %v509_v4 = vadd.f32 1.0, %v501_v62  ;;  %v516_v49 = vmul.f32 %v508_v63, %v308_v5 }
 0x167   :  { %v510_v15 = vadd.f32 1.0, %v502_v9 }
 0x168   :  { %v487_v7 = vmul.f32 %v1007_v1, %v447_v51  ;;  %v517_v8 = vmul.f32 %v509_v4, %v309_v3 }
 0x169   :  { %v518_v14 = vmul.f32 %v510_v15, %v310_v44 }
 0x16a   :  { %v495_v10 = vsub.f32 1.0, %v487_v7  ;;  %660 = vmatprep.mubr.f32.mxu0 %v517_v8 }
 0x16b   :  { %661 = vmatmul.mubr.f32.gmra.mrb[6].mxu0 %v516_v49 }
 0x16c   :  { %v503_v0 = vmul.f32 %v495_v10, %v335_v13 }
 0x16e   :  { %v511_v16 = vadd.f32 1.0, %v503_v0 }
 0x170   :  { %v519_v17 = vmul.f32 %v511_v16, %v311_v46 }
 0x172   :  { %735 = vmatprep.mubr.f32.mxu1 %v519_v17 }
 0x173   :  { %736 = vmatmul.mubr.f32.gmra.mrb[6].mxu1 %v518_v14 }
 0x236   :  { %v794_v18 = vpop.f32.mrb[4].mxu0 }
 0x237   :  { %v795_v57 = vpop.f32.mrb[5].mxu0  ;;  %v832_v21 = vpop.f32.mrb[4].mxu1 }
 0x238   :  { %v796_v56 = vadd.f32 %v795_v57, %v794_v18  ;;  %v833_v28 = vpop.f32.mrb[5].mxu1 }
 0x239   :  { %v834_v29 = vadd.f32 %v833_v28, %v832_v21 }
 0x23a   :  { %v658_v26 = vadd.f32 %v796_v56, %v761_v20 }
 0x23c   :  { %v733_v30 = vadd.f32 %v834_v29, %v658_v26 }
 0x23e   :  { %741 = vst [vmem:[#allocation8] sm:$0xff] %v733_v30  ;;  %v797_v6 = vpop.f32.mrb[6].mxu0 }
 0x23f   :  { %v798_v27 = vpop.f32.mrb[7].mxu0 }
 0x240   :  { %v799_v45 = vadd.f32 %v798_v27, %v797_v6 }
 0x242   :  { %v663_v33 = vadd.f32 %v799_v45, %v761_v20 }
 0x246   :  { %v835_v31 = vpop.f32.mrb[6].mxu1 }
 0x247   :  { %v836_v34 = vpop.f32.mrb[7].mxu1 }
 0x248   :  { %v837_v35 = vadd.f32 %v836_v34, %v835_v31 }
 0x24a   :  { %v738_v36 = vadd.f32 %v837_v35, %v663_v33 }
 0x24c   :  { %742 = vst [vmem:[#allocation8 + $0x8] sm:$0xff] %v738_v36 }
 0x24d   :  { %1085 = shalt.err (!%p1082_p0)
}
 0x24e   :  { %s1086_s12 = scalar_lea.hbm %s1353_s5, 256 }
 0x24f   :  { %p1087_p1 = scmp.ne.s32.totalorder %s1353_s5, %s1086_s12  ;;  %p1090_p2 = scmp.lt.u32.totalorder %s1086_s12, %s1353_s5 }
 0x251   :  { %p1092_p3 = pnand %p1090_p2, %p1087_p1 }
 0x253   :  { %1095 = shalt.err (!%p1092_p3)
}
 0x254   :  { %754 = dma.vmem_to_hbm [thread:$0]  %s749_s9, 256, %s1353_s5, [#allocation4], %s1106_s1, %s1106_s1, %s1107_s17  }
 0x255   :  { %1100 = dma.done.wait [#allocation4], 256  }
 0x256   :  { %1101 = vsyncadd [#allocation4], 4294967040 }
 0x257   :  { %758 = vsyncpa [#allocation3], 1 }
 0x258   :  { %759 = vsyncpa [#allocation6], 1 }
 0x259   :  { %760 = vsyncpa [#allocation4], 1 }

</bundles_post_ra>
